<compile_context>
chip_gen: v5e
topology: v5e:2x2
jax: 0.10.0
libtpu: 0.0.40
codegen_flags: <defaults>
</compile_context>

<pallas_src>
import functools
import numpy as np
import jax
import jax.numpy as jnp
from jax import lax
from jax.experimental import pallas as pl
from jax.experimental.pallas import tpu as pltpu


def _round_up(x, m):
    return ((x + m - 1) // m) * m


def _insulation_kernel(x_ref, wcolT_ref, wrowT_ref, seg_ref, poolT_ref, pool2T_ref,
                       iv_ref, dv_ref, band_ref, *, D, BC, nb, inv_k2):
    i = pl.program_id(0)

    # --- diagonal of AvgPool2d(K, stride=1) for nb (B,C) slices at once -------
    # t[r, d] = sum_j x[r, j] * wcolT[j, d]            (MXU, lane contraction)
    t = jnp.dot(x_ref[...], wcolT_ref[...], preferred_element_type=jnp.float32)
    # diag[b, d] = sum_{h in row-window d} t[b*H + h, d] (VPU select + MXU segsum)
    diag = jnp.dot(seg_ref[...], t * wrowT_ref[...],
                   preferred_element_type=jnp.float32) * inv_k2
    row0 = pl.multiple_of(i * nb, nb)
    iv_ref[pl.ds(row0, nb), :] = diag                 # raw pooled diagonal

    # --- last step: iv = log2(raw/mean), dv, band (fused, lane-dense) ---------
    @pl.when(i == pl.num_programs(0) - 1)
    def _():
        raw = iv_ref[...]                             # (BC_pad, D_pad); pad cols/rows = 0
        mean = jnp.sum(raw) * (1.0 / (BC * D))        # global mean over valid entries
        rix = lax.broadcasted_iota(jnp.int32, raw.shape, 0)
        cix = lax.broadcasted_iota(jnp.int32, raw.shape, 1)
        raw = jnp.where((rix < BC) & (cix < D), raw, mean)   # keep log2 finite on pad
        iv = jnp.log2(raw / mean)
        iv_ref[...] = iv
        # dv = AvgPool1d(iv[ds:]) - AvgPool1d(iv[:-ds]) via one banded matrix;
        # dv2[:, j] == dv[:, j+2] (shifted matrix) -> band without lane shifts.
        dv = jnp.dot(iv, poolT_ref[...], preferred_element_type=jnp.float32)
        dv2 = jnp.dot(iv, pool2T_ref[...], preferred_element_type=jnp.float32)
        dv_ref[...] = dv
        band_ref[...] = jnp.where((dv < 0.0) & (dv2 > 0.0), 1.0, 0.0)


def compute_insulation(x, window_radius=10, deriv_size=10, nb=8):
    B, C, H, W = x.shape
    K = 2 * window_radius + 1
    ds = deriv_size
    D = min(H, W) - K + 1            # diagonal length after 2-D avg-pool
    L = D - 2 * ds + 1               # length of dv
    assert D >= 1 and L >= 3, "input too small for window_radius/deriv_size"

    BC = B * C
    num_chunks = -(-BC // nb)
    BC_pad = num_chunks * nb
    D_pad = _round_up(D, 128)
    L_pad = _round_up(L, 128)

    x_flat = jnp.asarray(x, jnp.float32).reshape(BC, H, W)
    if BC_pad != BC:
        x_flat = jnp.concatenate(
            [x_flat, jnp.zeros((BC_pad - BC, H, W), jnp.float32)], axis=0)
    x2 = x_flat.reshape(BC_pad * H, W)               # 2-D, lane = W

    # ---- grid-invariant constants (built once, host-side) --------------------
    dcol = np.arange(D_pad)[None, :]
    jw = np.arange(W)[:, None]
    wcolT = ((jw >= dcol) & (jw < dcol + K) & (dcol < D)).astype(np.float32)   # (W, D_pad)
    hw = np.arange(H)[:, None]
    wrowT = ((hw >= dcol) & (hw < dcol + K) & (dcol < D)).astype(np.float32)   # (H, D_pad)
    wrowT_rep = np.tile(wrowT, (nb, 1))                                        # (nb*H, D_pad)
    bsel = np.arange(nb)[:, None]
    rsel = np.arange(nb * H)[None, :]
    seg = ((rsel >= bsel * H) & (rsel < (bsel + 1) * H)).astype(np.float32)    # (nb, nb*H)

    dd = np.arange(D_pad)[:, None]
    jj = np.arange(L_pad)[None, :]

    def _pool_matrix(offset):
        jv = jj + offset
        top = (dd >= jv + ds) & (dd < jv + 2 * ds)
        bot = (dd >= jv) & (dd < jv + ds)
        m = (top.astype(np.float32) - bot.astype(np.float32)) / float(ds)
        m = m * (jv < L)
        return m.astype(np.float32)                                            # (D_pad, L_pad)

    poolT = _pool_matrix(0)
    pool2T = _pool_matrix(2)

    iv_p, dv_p, band_p = pl.pallas_call(
        functools.partial(_insulation_kernel, D=D, BC=BC, nb=nb,
                          inv_k2=1.0 / (K * K)),
        grid=(num_chunks,),
        in_specs=[
            pl.BlockSpec((nb * H, W), lambda i: (i, 0)),        # x chunk
            pl.BlockSpec((W, D_pad), lambda i: (0, 0)),         # wcolT   (constant)
            pl.BlockSpec((nb * H, D_pad), lambda i: (0, 0)),    # wrowT_rep (constant)
            pl.BlockSpec((nb, nb * H), lambda i: (0, 0)),       # seg     (constant)
            pl.BlockSpec((D_pad, L_pad), lambda i: (0, 0)),     # poolT   (constant)
            pl.BlockSpec((D_pad, L_pad), lambda i: (0, 0)),     # pool2T  (constant)
        ],
        out_specs=(
            pl.BlockSpec((BC_pad, D_pad), lambda i: (0, 0)),    # iv (resident accumulator)
            pl.BlockSpec((BC_pad, L_pad), lambda i: (0, 0)),    # dv
            pl.BlockSpec((BC_pad, L_pad), lambda i: (0, 0)),    # band (0/1 f32)
        ),
        out_shape=(
            jax.ShapeDtypeStruct((BC_pad, D_pad), jnp.float32),
            jax.ShapeDtypeStruct((BC_pad, L_pad), jnp.float32),
            jax.ShapeDtypeStruct((BC_pad, L_pad), jnp.float32),
        ),
        compiler_params=pltpu.CompilerParams(
            dimension_semantics=("arbitrary",),        # accumulator + fused finalize
            vmem_limit_bytes=32 * 1024 * 1024,
        ),
    )(x2, jnp.asarray(wcolT), jnp.asarray(wrowT_rep), jnp.asarray(seg),
      jnp.asarray(poolT), jnp.asarray(pool2T))

    iv = iv_p[:BC, :D].reshape(B, C, D)
    dv = dv_p[:BC, :L].reshape(B, C, L)
    band = band_p[:BC, :L - 2].reshape(B, C, L - 2) > 0.5

    # TODO(synk): ragged per-batch boundary index lists (torch.where) have no
    # fixed-shape Pallas equivalent; extracted host-side from channel 0 of band.
    band_np = np.asarray(band)
    boundaries = [np.nonzero(band_np[i, 0])[0] + window_radius + deriv_size
                  for i in range(B)]
    return iv, dv, boundaries


def _reference(x, window_radius, deriv_size):
    """Pure-JAX reference mirroring the PyTorch forward (iv, dv only)."""
    K = 2 * window_radius + 1
    sums = lax.reduce_window(x, 0.0, lax.add, (1, 1, K, K), (1, 1, 1, 1), "VALID")
    pooled = sums / (K * K)
    n = min(pooled.shape[2], pooled.shape[3])
    diag = jnp.stack([pooled[:, :, d, d] for d in range(n)], axis=-1)
    iv = jnp.log2(diag / jnp.mean(diag))
    pool1 = lambda a: lax.reduce_window(
        a, 0.0, lax.add, (1, 1, deriv_size), (1, 1, 1), "VALID") / deriv_size
    dv = pool1(iv[:, :, deriv_size:]) - pool1(iv[:, :, :-deriv_size])
    return iv, dv


if __name__ == "__main__":
    key = jax.random.PRNGKey(0)
    B, C, H, W = 2, 8, 64, 64
    window_radius, deriv_size = 10, 10   # module defaults
    # positive inputs (insulation scores are log2 ratios of pooled contact counts)
    x = jax.random.uniform(key, (B, C, H, W), dtype=jnp.float32,
                           minval=0.1, maxval=1.0)

    iv, dv, boundaries = compute_insulation(x, window_radius, deriv_size)
    jax.block_until_ready((iv, dv))

    iv_ref, dv_ref = _reference(x, window_radius, deriv_size)
    np.testing.assert_allclose(np.asarray(iv), np.asarray(iv_ref),
                               rtol=2e-4, atol=2e-5)
    np.testing.assert_allclose(np.asarray(dv), np.asarray(dv_ref),
                               rtol=2e-4, atol=2e-5)
    # band/boundaries consistency with dv (same semantics as the torch pad/cat dance)
    band_chk = (np.asarray(dv)[:, :, :-2] < 0) & (np.asarray(dv)[:, :, 2:] > 0)
    exp_bounds = [np.nonzero(band_chk[i, 0])[0] + window_radius + deriv_size
                  for i in range(B)]
    assert all(np.array_equal(a, b) for a, b in zip(boundaries, exp_bounds))
    print("KERNEL_OK")
</pallas_src>

<mosaic_0001>
module attributes {stable_mosaic.version = 11 : i64} {
  func.func @_insulation_kernel(%arg0: i32, %arg1: memref<512x64xf32, #tpu.memory_space<vmem>>, %arg2: memref<64x128xf32, #tpu.memory_space<vmem>>, %arg3: memref<512x128xf32, #tpu.memory_space<vmem>>, %arg4: memref<8x512xf32, #tpu.memory_space<vmem>>, %arg5: memref<128x128xf32, #tpu.memory_space<vmem>>, %arg6: memref<128x128xf32, #tpu.memory_space<vmem>>, %arg7: memref<16x128xf32, #tpu.memory_space<vmem>>, %arg8: memref<16x128xf32, #tpu.memory_space<vmem>>, %arg9: memref<16x128xf32, #tpu.memory_space<vmem>>) attributes {dimension_semantics = [#tpu.dimension_semantics<arbitrary>], iteration_bounds = array<i64: 2>, scalar_prefetch = 0 : i64, scratch_operands = 0 : i64, tpu.core_type = #tpu.core_type<tc>, window_params = [{transform_indices = @transform_0, window_bounds = array<i64: 512, 64>}, {pipeline_mode = #tpu.pipeline_mode<synchronous>, transform_indices = @transform_1, window_bounds = array<i64: 64, 128>}, {pipeline_mode = #tpu.pipeline_mode<synchronous>, transform_indices = @transform_2, window_bounds = array<i64: 512, 128>}, {pipeline_mode = #tpu.pipeline_mode<synchronous>, transform_indices = @transform_3, window_bounds = array<i64: 8, 512>}, {pipeline_mode = #tpu.pipeline_mode<synchronous>, transform_indices = @transform_4, window_bounds = array<i64: 128, 128>}, {pipeline_mode = #tpu.pipeline_mode<synchronous>, transform_indices = @transform_5, window_bounds = array<i64: 128, 128>}, {pipeline_mode = #tpu.pipeline_mode<synchronous>, transform_indices = @transform_6, window_bounds = array<i64: 16, 128>}, {pipeline_mode = #tpu.pipeline_mode<synchronous>, transform_indices = @transform_7, window_bounds = array<i64: 16, 128>}, {pipeline_mode = #tpu.pipeline_mode<synchronous>, transform_indices = @transform_8, window_bounds = array<i64: 16, 128>}]} {
    %c0 = arith.constant 0 : index
    %c0_0 = arith.constant 0 : index
    %0 = vector.load %arg1[%c0, %c0_0] : memref<512x64xf32, #tpu.memory_space<vmem>>, vector<512x64xf32>
    %c0_1 = arith.constant 0 : index
    %c0_2 = arith.constant 0 : index
    %1 = vector.load %arg2[%c0_1, %c0_2] : memref<64x128xf32, #tpu.memory_space<vmem>>, vector<64x128xf32>
    %cst = arith.constant dense<0.000000e+00> : vector<512x128xf32>
    %2 = tpu.matmul %0, %1, %cst {dimension_numbers = #tpu.dot_dimension_numbers<[1], [0], [0], [1], [0, 0, 1, 1], [], []>} : vector<512x64xf32>, vector<64x128xf32>, vector<512x128xf32> -> vector<512x128xf32>
    %c0_3 = arith.constant 0 : index
    %c0_4 = arith.constant 0 : index
    %3 = vector.load %arg4[%c0_3, %c0_4] : memref<8x512xf32, #tpu.memory_space<vmem>>, vector<8x512xf32>
    %c0_5 = arith.constant 0 : index
    %c0_6 = arith.constant 0 : index
    %4 = vector.load %arg3[%c0_5, %c0_6] : memref<512x128xf32, #tpu.memory_space<vmem>>, vector<512x128xf32>
    %5 = arith.mulf %2, %4 : vector<512x128xf32>
    %cst_7 = arith.constant dense<0.000000e+00> : vector<8x128xf32>
    %6 = tpu.matmul %3, %5, %cst_7 {dimension_numbers = #tpu.dot_dimension_numbers<[1], [0], [0], [1], [0, 0, 1, 1], [], []>} : vector<8x512xf32>, vector<512x128xf32>, vector<8x128xf32> -> vector<8x128xf32>
    %cst_8 = arith.constant 0.00226757373 : f32
    %7 = vector.broadcast %cst_8 : f32 to vector<8x128xf32>
    %8 = arith.mulf %6, %7 : vector<8x128xf32>
    %c8_i32 = arith.constant 8 : i32
    %9 = arith.muli %arg0, %c8_i32 : i32
    %10 = tpu.assume_multiple %9, 8 : i32
    %11 = arith.index_cast %10 : i32 to index
    %c0_9 = arith.constant 0 : index
    %12 = vector.load %arg7[%11, %c0_9] : memref<16x128xf32, #tpu.memory_space<vmem>>, vector<8x128xf32>
    tpu.vector_store %arg7[%11, %c0_9], %8 {strides = array<i32>} : memref<16x128xf32, #tpu.memory_space<vmem>>, vector<8x128xf32>,
    %c1_i32 = arith.constant 1 : i32
    %13 = arith.cmpi eq, %arg0, %c1_i32 : i32
    %14 = arith.extui %13 : i1 to i32
    %c0_i32 = arith.constant 0 : i32
    %15 = arith.cmpi ne, %14, %c0_i32 : i32
    scf.if %15 {
      %c0_10 = arith.constant 0 : index
      %c0_11 = arith.constant 0 : index
      %16 = vector.load %arg7[%c0_10, %c0_11] : memref<16x128xf32, #tpu.memory_space<vmem>>, vector<16x128xf32>
      %17 = vector.shape_cast %16 : vector<16x128xf32> to vector<1x16x128xf32>
      %cst_12 = arith.constant dense<0.000000e+00> : vector<1xf32>
      %18 = vector.multi_reduction <add>, %17, %cst_12 [1, 2] : vector<1x16x128xf32> to vector<1xf32>
      %19 = vector.shape_cast %18 : vector<1xf32> to vector<1x1x1xf32>
      %20 = vector.extract %19[0, 0, 0] : f32 from vector<1x1x1xf32>
      %cst_13 = arith.constant 0.00142045459 : f32
      %21 = arith.mulf %20, %cst_13 : f32
      %22 = tpu.iota {dimensions = array<i32: 0>} : vector<16x128xi32>
      %23 = tpu.iota {dimensions = array<i32: 1>} : vector<16x128xi32>
      %c16_i32 = arith.constant 16 : i32
      %24 = vector.broadcast %c16_i32 : i32 to vector<16x128xi32>
      %25 = arith.cmpi slt, %22, %24 : vector<16x128xi32>
      %c44_i32 = arith.constant 44 : i32
      %26 = vector.broadcast %c44_i32 : i32 to vector<16x128xi32>
      %27 = arith.cmpi slt, %23, %26 : vector<16x128xi32>
      %28 = arith.andi %25, %27 : vector<16x128xi1>
      %29 = vector.broadcast %21 : f32 to vector<16x128xf32>
      %30 = arith.select %28, %16, %29 : vector<16x128xi1>, vector<16x128xf32>
      %31 = vector.broadcast %21 : f32 to vector<16x128xf32>
      %32 = arith.divf %30, %31 : vector<16x128xf32>
      %33 = math.log %32 : vector<16x128xf32>
      %cst_14 = arith.constant 2.000000e+00 : f32
      %34 = math.log %cst_14 : f32
      %35 = vector.broadcast %34 : f32 to vector<16x128xf32>
      %36 = arith.divf %33, %35 : vector<16x128xf32>
      %c0_15 = arith.constant 0 : index
      %c0_16 = arith.constant 0 : index
      %37 = vector.load %arg7[%c0_15, %c0_16] : memref<16x128xf32, #tpu.memory_space<vmem>>, vector<16x128xf32>
      tpu.vector_store %arg7[%c0_15, %c0_16], %36 {strides = array<i32>} : memref<16x128xf32, #tpu.memory_space<vmem>>, vector<16x128xf32>,
      %c0_17 = arith.constant 0 : index
      %c0_18 = arith.constant 0 : index
      %38 = vector.load %arg5[%c0_17, %c0_18] : memref<128x128xf32, #tpu.memory_space<vmem>>, vector<128x128xf32>
      %cst_19 = arith.constant dense<0.000000e+00> : vector<16x128xf32>
      %39 = tpu.matmul %36, %38, %cst_19 {dimension_numbers = #tpu.dot_dimension_numbers<[1], [0], [0], [1], [0, 0, 1, 1], [], []>} : vector<16x128xf32>, vector<128x128xf32>, vector<16x128xf32> -> vector<16x128xf32>
      %c0_20 = arith.constant 0 : index
      %c0_21 = arith.constant 0 : index
      %40 = vector.load %arg6[%c0_20, %c0_21] : memref<128x128xf32, #tpu.memory_space<vmem>>, vector<128x128xf32>
      %cst_22 = arith.constant dense<0.000000e+00> : vector<16x128xf32>
      %41 = tpu.matmul %36, %40, %cst_22 {dimension_numbers = #tpu.dot_dimension_numbers<[1], [0], [0], [1], [0, 0, 1, 1], [], []>} : vector<16x128xf32>, vector<128x128xf32>, vector<16x128xf32> -> vector<16x128xf32>
      %c0_23 = arith.constant 0 : index
      %c0_24 = arith.constant 0 : index
      %42 = vector.load %arg8[%c0_23, %c0_24] : memref<16x128xf32, #tpu.memory_space<vmem>>, vector<16x128xf32>
      tpu.vector_store %arg8[%c0_23, %c0_24], %39 {strides = array<i32>} : memref<16x128xf32, #tpu.memory_space<vmem>>, vector<16x128xf32>,
      %cst_25 = arith.constant 0.000000e+00 : f32
      %43 = vector.broadcast %cst_25 : f32 to vector<16x128xf32>
      %44 = arith.cmpf olt, %39, %43 : vector<16x128xf32>
      %cst_26 = arith.constant 0.000000e+00 : f32
      %45 = vector.broadcast %cst_26 : f32 to vector<16x128xf32>
      %46 = arith.cmpf ogt, %41, %45 : vector<16x128xf32>
      %47 = arith.andi %44, %46 : vector<16x128xi1>
      %cst_27 = arith.constant 1.000000e+00 : f32
      %cst_28 = arith.constant 0.000000e+00 : f32
      %48 = vector.broadcast %cst_27 : f32 to vector<16x128xf32>
      %49 = vector.broadcast %cst_28 : f32 to vector<16x128xf32>
      %50 = arith.select %47, %48, %49 : vector<16x128xi1>, vector<16x128xf32>
      %c0_29 = arith.constant 0 : index
      %c0_30 = arith.constant 0 : index
      %51 = vector.load %arg9[%c0_29, %c0_30] : memref<16x128xf32, #tpu.memory_space<vmem>>, vector<16x128xf32>
      tpu.vector_store %arg9[%c0_29, %c0_30], %50 {strides = array<i32>} : memref<16x128xf32, #tpu.memory_space<vmem>>, vector<16x128xf32>,
    } else {
    }
    return
  }
  func.func @transform_0(%arg0: i32) -> (i32, i32) {
    %c0_i32 = arith.constant 0 : i32
    %c0_i32_0 = arith.constant 0 : i32
    return %arg0, %c0_i32 : i32, i32
  }
  func.func @transform_1(%arg0: i32) -> (i32, i32) {
    %c0_i32 = arith.constant 0 : i32
    %c0_i32_0 = arith.constant 0 : i32
    %c0_i32_1 = arith.constant 0 : i32
    return %c0_i32, %c0_i32_0 : i32, i32
  }
  func.func @transform_2(%arg0: i32) -> (i32, i32) {
    %c0_i32 = arith.constant 0 : i32
    %c0_i32_0 = arith.constant 0 : i32
    %c0_i32_1 = arith.constant 0 : i32
    return %c0_i32, %c0_i32_0 : i32, i32
  }
  func.func @transform_3(%arg0: i32) -> (i32, i32) {
    %c0_i32 = arith.constant 0 : i32
    %c0_i32_0 = arith.constant 0 : i32
    %c0_i32_1 = arith.constant 0 : i32
    return %c0_i32, %c0_i32_0 : i32, i32
  }
  func.func @transform_4(%arg0: i32) -> (i32, i32) {
    %c0_i32 = arith.constant 0 : i32
    %c0_i32_0 = arith.constant 0 : i32
    %c0_i32_1 = arith.constant 0 : i32
    return %c0_i32, %c0_i32_0 : i32, i32
  }
  func.func @transform_5(%arg0: i32) -> (i32, i32) {
    %c0_i32 = arith.constant 0 : i32
    %c0_i32_0 = arith.constant 0 : i32
    %c0_i32_1 = arith.constant 0 : i32
    return %c0_i32, %c0_i32_0 : i32, i32
  }
  func.func @transform_6(%arg0: i32) -> (i32, i32) {
    %c0_i32 = arith.constant 0 : i32
    %c0_i32_0 = arith.constant 0 : i32
    %c0_i32_1 = arith.constant 0 : i32
    return %c0_i32, %c0_i32_0 : i32, i32
  }
  func.func @transform_7(%arg0: i32) -> (i32, i32) {
    %c0_i32 = arith.constant 0 : i32
    %c0_i32_0 = arith.constant 0 : i32
    %c0_i32_1 = arith.constant 0 : i32
    return %c0_i32, %c0_i32_0 : i32, i32
  }
  func.func @transform_8(%arg0: i32) -> (i32, i32) {
    %c0_i32 = arith.constant 0 : i32
    %c0_i32_0 = arith.constant 0 : i32
    %c0_i32_1 = arith.constant 0 : i32
    return %c0_i32, %c0_i32_0 : i32, i32
  }
}

</mosaic_0001>

<bundles_post_ra>
// kernel: tpu_custom_call.1
= control target key start
LH: loop header
LB: loop body
LE: loop exit
PB: predicated region body
PF: predicated region fallthrough
CT: control target
= control target key end

     0   :  { %14 = vsyncpa [#allocation3], 0  ;;  %s2187_s0 = inlined_call_operand.vmem [shape: f32[1024,64], index: 0, kind: input, shape index: {}]   ;;  %s2188_s1 = inlined_call_operand.vmem [shape: f32[64,128], index: 1, kind: input, shape index: {}]   ;;  %s2189_s2 = inlined_call_operand.vmem [shape: f32[512,128], index: 2, kind: input, shape index: {}]   ;;  %s2190_s3 = inlined_call_operand.vmem [shape: f32[8,512], index: 3, kind: input, shape index: {}]   ;;  %s2191_s4 = inlined_call_operand.vmem [shape: f32[128,128], index: 4, kind: input, shape index: {}]   ;;  %s2192_s5 = inlined_call_operand.vmem [shape: f32[128,128], index: 5, kind: input, shape index: {}]   ;;  %s2193_s6 = inlined_call_operand.hbm [shape: f32[16,128], index: 6, kind: output, shape index: {0}]   ;;  %s2194_s7 = inlined_call_operand.hbm [shape: f32[16,128], index: 7, kind: output, shape index: {1}]   ;;  %s2195_s8 = inlined_call_operand.hbm [shape: f32[16,128], index: 8, kind: output, shape index: {2}]  }
   0x1   :  { %15 = vsyncpa [#allocation5], 0  ;;  %s1565_s27 = smov 0  }
   0x2 LB: > { %s1571_s28 = sadd.s32 4294967295, %s1511_s27   ;;  %p1237_p0 = scmp.ge.s32.totalorder %s1511_s27, 1  ;;  %s1511_s27 = sphi %s1565_s27, %s21_s27  }
   0x3   : > { %p255_p1 = scmp.lt.s32.totalorder %s1511_s27, 3 }
   0x5   : > { %p256_p2 = pnand %p1237_p0, %p255_p1 }
   0x6   : > { %s1238_s11 = sshll.u32 (!%p256_p2), %s1571_s28, 6  ;;  %s1304_s24 = sshll.u32 (!%p256_p2), %s1571_s28, 3 }
   0x7   : > { %259 = sbr.rel (%p256_p2) target bundleno = 840 (0x348), region = 44  ;;  %p285_p3 = scmp.lt.s32.totalorder (!%p256_p2), %s1238_s11, 127 }
   0x8   : > { %p1305_p4 = scmp.ne.s32.totalorder (!%p256_p2), %s1571_s28, 1 }
   0xc   : > { %v361_v0 = vld [vmem:[%s2188_s1 + $0x38] sm:$0xff]  ;;  %v360_v1 = vld [vmem:[%s2188_s1 + $0x30] sm:$0xff]  ;;  %v359_v2 = vld [vmem:[%s2188_s1 + $0x28] sm:$0xff]  ;;  %s2197_s11 = smov (!%p285_p3, %s1238_s11), 127  ;;  %vm362_vm0 = vcmask 523264  }
   0xd   : > { %563 = vmatpush.msra.mxu0 %v361_v0  ;;  %1314 = vmatpush.msra.mxu1 %v361_v0  ;;  %v358_v3 = vld [vmem:[%s2188_s1 + $0x20] sm:$0xff]  ;;  %v357_v4 = vld [vmem:[%s2188_s1 + $0x18] sm:$0xff]  ;;  %s1239_s18 = sshll.u32 %s2197_s11, 3  ;;  %v356_v5 = vld [vmem:[%s2188_s1 + $0x10] sm:$0xff] }
   0xe   : > { %1315 = vmatpush.msra.mxu2 %v361_v0  ;;  %1316 = vmatpush.msra.mxu3 %v361_v0  ;;  %v355_v6 = vld [vmem:[%s2188_s1 + $0x8] sm:$0xff]  ;;  %s1600_s25 = scalar_lea.vmem %s2187_s0, %s1239_s18  ;;  %v354_v7 = vld [vmem:[%s2188_s1] sm:$0xff] }
   0xf   : > { %564 = vmatpush.msra.mxu0 %v360_v1  ;;  %1317 = vmatpush.msra.mxu1 %v360_v1  ;;  %v290_v8 = vld [vmem:[%s1600_s25] sm:$0xff]  ;;  %v309_v9 = vld [vmem:[%s1600_s25 + $0x98] sm:$0xff]  ;;  %v319_v10 = vld [vmem:[%s1600_s25 + $0xe8] sm:$0xff] }
  0x10   : > { %1318 = vmatpush.msra.mxu2 %v360_v1  ;;  %1319 = vmatpush.msra.mxu3 %v360_v1  ;;  %v337_v11 = vld [vmem:[%s1600_s25 + $0x178] sm:$0xff]  ;;  %v291_v12 = vld [vmem:[%s1600_s25 + $0x8] sm:$0xff]  ;;  %v310_v13 = vld [vmem:[%s1600_s25 + $0xa0] sm:$0xff] }
  0x11   : > { %565 = vmatpush.msra.mxu0 %v359_v2  ;;  %1320 = vmatpush.msra.mxu1 %v359_v2  ;;  %v320_v14 = vld [vmem:[%s1600_s25 + $0xf0] sm:$0xff]  ;;  %v338_v15 = vld [vmem:[%s1600_s25 + $0x180] sm:$0xff]  ;;  %v311_v17 = vld [vmem:[%s1600_s25 + $0xa8] sm:$0xff] }
  0x12   : > { %1321 = vmatpush.msra.mxu2 %v359_v2  ;;  %1322 = vmatpush.msra.mxu3 %v359_v2  ;;  %v292_v16 = vld [vmem:[%s1600_s25 + $0x10] sm:$0xff]  ;;  %v321_v18 = vld [vmem:[%s1600_s25 + $0xf8] sm:$0xff]  ;;  %v339_v19 = vld [vmem:[%s1600_s25 + $0x188] sm:$0xff] }
  0x13   : > { %566 = vmatpush.msra.mxu0 %v358_v3  ;;  %1323 = vmatpush.msra.mxu1 %v358_v3  ;;  %v293_v20 = vld [vmem:[%s1600_s25 + $0x18] sm:$0xff]  ;;  %v312_v21 = vld [vmem:[%s1600_s25 + $0xb0] sm:$0xff]  ;;  %v322_v22 = vld [vmem:[%s1600_s25 + $0x100] sm:$0xff] }
  0x14   : > { %1324 = vmatpush.msra.mxu2 %v358_v3  ;;  %1325 = vmatpush.msra.mxu3 %v358_v3  ;;  %v340_v23 = vld [vmem:[%s1600_s25 + $0x190] sm:$0xff]  ;;  %v294_v24 = vld [vmem:[%s1600_s25 + $0x20] sm:$0xff]  ;;  %v313_v25 = vld [vmem:[%s1600_s25 + $0xb8] sm:$0xff] }
  0x15   : > { %567 = vmatpush.msra.mxu0 %v357_v4  ;;  %1326 = vmatpush.msra.mxu1 %v357_v4  ;;  %v323_v26 = vld [vmem:[%s1600_s25 + $0x108] sm:$0xff]  ;;  %v341_v27 = vld [vmem:[%s1600_s25 + $0x198] sm:$0xff]  ;;  %v314_v29 = vld [vmem:[%s1600_s25 + $0xc0] sm:$0xff] }
  0x16   : > { %1327 = vmatpush.msra.mxu2 %v357_v4  ;;  %1328 = vmatpush.msra.mxu3 %v357_v4  ;;  %v295_v28 = vld [vmem:[%s1600_s25 + $0x28] sm:$0xff]  ;;  %v324_v30 = vld [vmem:[%s1600_s25 + $0x110] sm:$0xff]  ;;  %v342_v31 = vld [vmem:[%s1600_s25 + $0x1a0] sm:$0xff] }
  0x17   : > { %568 = vmatpush.msra.mxu0 %v356_v5  ;;  %1329 = vmatpush.msra.mxu1 %v356_v5  ;;  %v296_v32 = vld [vmem:[%s1600_s25 + $0x30] sm:$0xff]  ;;  %v315_v33 = vld [vmem:[%s1600_s25 + $0xc8] sm:$0xff]  ;;  %v325_v34 = vld [vmem:[%s1600_s25 + $0x118] sm:$0xff] }
  0x18   : > { %1330 = vmatpush.msra.mxu2 %v356_v5  ;;  %1331 = vmatpush.msra.mxu3 %v356_v5  ;;  %v343_v35 = vld [vmem:[%s1600_s25 + $0x1a8] sm:$0xff]  ;;  %v297_v36 = vld [vmem:[%s1600_s25 + $0x38] sm:$0xff]  ;;  %v316_v37 = vld [vmem:[%s1600_s25 + $0xd0] sm:$0xff] }
  0x19   : > { %569 = vmatpush.msra.mxu0 %v355_v6  ;;  %1332 = vmatpush.msra.mxu1 %v355_v6  ;;  %v326_v38 = vld [vmem:[%s1600_s25 + $0x120] sm:$0xff]  ;;  %v344_v39 = vld [vmem:[%s1600_s25 + $0x1b0] sm:$0xff]  ;;  %v317_v41 = vld [vmem:[%s1600_s25 + $0xd8] sm:$0xff] }
  0x1a   : > { %1333 = vmatpush.msra.mxu2 %v355_v6  ;;  %1334 = vmatpush.msra.mxu3 %v355_v6  ;;  %v298_v40 = vld [vmem:[%s1600_s25 + $0x40] sm:$0xff]  ;;  %v327_v42 = vld [vmem:[%s1600_s25 + $0x128] sm:$0xff]  ;;  %v345_v43 = vld [vmem:[%s1600_s25 + $0x1b8] sm:$0xff] }
  0x1b   : > { %570 = vmatpush.msra.mxu0 %v354_v7  ;;  %1335 = vmatpush.msra.mxu1 %v354_v7  ;;  %v299_v44 = vld [vmem:[%s1600_s25 + $0x48] sm:$0xff]  ;;  %v318_v45 = vld [vmem:[%s1600_s25 + $0xe0] sm:$0xff]  ;;  %v328_v46 = vld [vmem:[%s1600_s25 + $0x130] sm:$0xff] }
  0x1c   : > { %1336 = vmatpush.msra.mxu2 %v354_v7  ;;  %1240 = vmatmul.msk.f32.vlgmr.msra.gmra.mxu0 %vm362_vm0, %v290_v8  ;;  %v346_v47 = vld [vmem:[%s1600_s25 + $0x1c0] sm:$0xff]  ;;  %v300_v48 = vld [vmem:[%s1600_s25 + $0x50] sm:$0xff]  ;;  %v329_v49 = vld [vmem:[%s1600_s25 + $0x138] sm:$0xff] }
  0x1d   : > { %1259 = vmatmul.msk.f32.vlgmr.msra.gmra.mxu1 %vm362_vm0, %v309_v9  ;;  %1269 = vmatmul.msk.f32.vlgmr.msra.gmra.mxu2 %vm362_vm0, %v319_v10  ;;  %v347_v50 = vld [vmem:[%s1600_s25 + $0x1c8] sm:$0xff]  ;;  %v301_v51 = vld [vmem:[%s1600_s25 + $0x58] sm:$0xff]  ;;  %v330_v52 = vld [vmem:[%s1600_s25 + $0x140] sm:$0xff] }
  0x1e   : > { %1337 = vmatpush.msra.mxu3 %v354_v7  ;;  %v348_v53 = vld [vmem:[%s1600_s25 + $0x1d0] sm:$0xff]  ;;  %v302_v54 = vld [vmem:[%s1600_s25 + $0x60] sm:$0xff]  ;;  %v331_v55 = vld [vmem:[%s1600_s25 + $0x148] sm:$0xff] }
  0x1f   : > { %1287 = vmatmul.msk.f32.vlgmr.msra.gmra.mxu3 %vm362_vm0, %v337_v11  ;;  %v349_v56 = vld [vmem:[%s1600_s25 + $0x1d8] sm:$0xff]  ;;  %v303_v57 = vld [vmem:[%s1600_s25 + $0x68] sm:$0xff]  ;;  %v332_v58 = vld [vmem:[%s1600_s25 + $0x150] sm:$0xff] }
  0x20   : > { %v350_v59 = vld [vmem:[%s1600_s25 + $0x1e0] sm:$0xff]  ;;  %v304_v60 = vld [vmem:[%s1600_s25 + $0x70] sm:$0xff]  ;;  %v333_v61 = vld [vmem:[%s1600_s25 + $0x158] sm:$0xff] }
  0x21   : > { %v351_v62 = vld [vmem:[%s1600_s25 + $0x1e8] sm:$0xff]  ;;  %v305_v63 = vld [vmem:[%s1600_s25 + $0x78] sm:$0xff]  ;;  %v334_v0 = vld [vmem:[%s1600_s25 + $0x160] sm:$0xff] }
  0x22   : > { %v352_v1 = vld [vmem:[%s1600_s25 + $0x1f0] sm:$0xff]  ;;  %v306_v3 = vld [vmem:[%s1600_s25 + $0x80] sm:$0xff]  ;;  %v335_v5 = vld [vmem:[%s1600_s25 + $0x168] sm:$0xff] }
  0x23   : > { %v353_v6 = vld [vmem:[%s1600_s25 + $0x1f8] sm:$0xff]  ;;  %v307_v10 = vld [vmem:[%s1600_s25 + $0x88] sm:$0xff] }
  0x24   : > { %1241 = vmatmul.msk.f32.gmra.mxu0 %vm362_vm0, %v291_v12  ;;  %v815_v8 = vld [vmem:[%s2189_s2 + $0x178] sm:$0xff]  ;;  %v336_v12 = vld [vmem:[%s1600_s25 + $0x170] sm:$0xff] }
  0x25   : > { %1260 = vmatmul.msk.f32.gmra.mxu1 %vm362_vm0, %v310_v13  ;;  %1270 = vmatmul.msk.f32.gmra.mxu2 %vm362_vm0, %v320_v14 }
  0x27   : > { %1288 = vmatmul.msk.f32.gmra.mxu3 %vm362_vm0, %v338_v15 }
  0x2c   : > { %1242 = vmatmul.msk.f32.gmra.mxu0 %vm362_vm0, %v292_v16 }
  0x2d   : > { %1261 = vmatmul.msk.f32.gmra.mxu1 %vm362_vm0, %v311_v17  ;;  %1271 = vmatmul.msk.f32.gmra.mxu2 %vm362_vm0, %v321_v18  ;;  %v308_v17 = vld [vmem:[%s1600_s25 + $0x90] sm:$0xff]  ;;  %s978_s25 = scalar_lea.vmem [#allocation2], %s1304_s24 }
  0x2f   : > { %1289 = vmatmul.msk.f32.gmra.mxu3 %vm362_vm0, %v339_v19 }
  0x34   : > { %1243 = vmatmul.msk.f32.gmra.mxu0 %vm362_vm0, %v293_v20  ;;  %v799_v20 = vld [vmem:[%s2189_s2 + $0xf8] sm:$0xff] }
  0x35   : > { %1262 = vmatmul.msk.f32.gmra.mxu1 %vm362_vm0, %v312_v21  ;;  %1272 = vmatmul.msk.f32.gmra.mxu2 %vm362_vm0, %v322_v22  ;;  %v798_v21 = vld [vmem:[%s2189_s2 + $0xf0] sm:$0xff] }
  0x37   : > { %1290 = vmatmul.msk.f32.gmra.mxu3 %vm362_vm0, %v340_v23 }
  0x3c   : > { %1244 = vmatmul.msk.f32.gmra.mxu0 %vm362_vm0, %v294_v24 }
  0x3d   : > { %1263 = vmatmul.msk.f32.gmra.mxu1 %vm362_vm0, %v313_v25  ;;  %1273 = vmatmul.msk.f32.gmra.mxu2 %vm362_vm0, %v323_v26  ;;  %v797_v25 = vld [vmem:[%s2189_s2 + $0xe8] sm:$0xff] }
  0x3f   : > { %1291 = vmatmul.msk.f32.gmra.mxu3 %vm362_vm0, %v341_v27 }
  0x44   : > { %1245 = vmatmul.msk.f32.gmra.mxu0 %vm362_vm0, %v295_v28 }
  0x45   : > { %1264 = vmatmul.msk.f32.gmra.mxu1 %vm362_vm0, %v314_v29  ;;  %1274 = vmatmul.msk.f32.gmra.mxu2 %vm362_vm0, %v324_v30 }
  0x47   : > { %1292 = vmatmul.msk.f32.gmra.mxu3 %vm362_vm0, %v342_v31 }
  0x4c   : > { %1246 = vmatmul.msk.f32.gmra.mxu0 %vm362_vm0, %v296_v32 }
  0x4d   : > { %1265 = vmatmul.msk.f32.gmra.mxu1 %vm362_vm0, %v315_v33  ;;  %1275 = vmatmul.msk.f32.gmra.mxu2 %vm362_vm0, %v325_v34 }
  0x4f   : > { %1293 = vmatmul.msk.f32.gmra.mxu3 %vm362_vm0, %v343_v35 }
  0x54   : > { %1247 = vmatmul.msk.f32.gmra.mxu0 %vm362_vm0, %v297_v36 }
  0x55   : > { %1266 = vmatmul.msk.f32.gmra.mxu1 %vm362_vm0, %v316_v37  ;;  %1276 = vmatmul.msk.f32.gmra.mxu2 %vm362_vm0, %v326_v38 }
  0x57   : > { %1294 = vmatmul.msk.f32.gmra.mxu3 %vm362_vm0, %v344_v39 }
  0x5c   : > { %1248 = vmatmul.msk.f32.gmra.mxu0 %vm362_vm0, %v298_v40 }
  0x5d   : > { %1267 = vmatmul.msk.f32.gmra.mxu1 %vm362_vm0, %v317_v41  ;;  %1277 = vmatmul.msk.f32.gmra.mxu2 %vm362_vm0, %v327_v42 }
  0x5f   : > { %1295 = vmatmul.msk.f32.gmra.mxu3 %vm362_vm0, %v345_v43 }
  0x64   : > { %1249 = vmatmul.msk.f32.gmra.mxu0 %vm362_vm0, %v299_v44 }
  0x65   : > { %1268 = vmatmul.msk.f32.gmra.mxu1 %vm362_vm0, %v318_v45  ;;  %1278 = vmatmul.msk.f32.gmra.mxu2 %vm362_vm0, %v328_v46 }
  0x67   : > { %1296 = vmatmul.msk.f32.gmra.mxu3 %vm362_vm0, %v346_v47 }
  0x6c   : > { %1250 = vmatmul.msk.f32.gmra.mxu0 %vm362_vm0, %v300_v48 }
  0x6d   : > { %1279 = vmatmul.msk.f32.gmra.mxu2 %vm362_vm0, %v329_v49 }
  0x6f   : > { %1297 = vmatmul.msk.f32.gmra.mxu3 %vm362_vm0, %v347_v50  ;;  %v795_v50 = vld [vmem:[%s2189_s2 + $0xd8] sm:$0xff] }
  0x74   : > { %1251 = vmatmul.msk.f32.gmra.mxu0 %vm362_vm0, %v301_v51 }
  0x75   : > { %1280 = vmatmul.msk.f32.gmra.mxu2 %vm362_vm0, %v330_v52  ;;  %v796_v52 = vld [vmem:[%s2189_s2 + $0xe0] sm:$0xff] }
  0x77   : > { %1298 = vmatmul.msk.f32.gmra.mxu3 %vm362_vm0, %v348_v53 }
  0x7c   : > { %1252 = vmatmul.msk.f32.gmra.mxu0 %vm362_vm0, %v302_v54  ;;  %v794_v54 = vld [vmem:[%s2189_s2 + $0xd0] sm:$0xff] }
  0x7d   : > { %1281 = vmatmul.msk.f32.gmra.mxu2 %vm362_vm0, %v331_v55 }
  0x7f   : > { %1299 = vmatmul.msk.f32.gmra.mxu3 %vm362_vm0, %v349_v56 }
  0x84   : > { %1253 = vmatmul.msk.f32.gmra.mxu0 %vm362_vm0, %v303_v57 }
  0x85   : > { %1282 = vmatmul.msk.f32.gmra.mxu2 %vm362_vm0, %v332_v58 }
  0x87   : > { %1300 = vmatmul.msk.f32.gmra.mxu3 %vm362_vm0, %v350_v59  ;;  %v793_v59 = vld [vmem:[%s2189_s2 + $0xc8] sm:$0xff] }
  0x8c   : > { %1254 = vmatmul.msk.f32.gmra.mxu0 %vm362_vm0, %v304_v60 }
  0x8d   : > { %1283 = vmatmul.msk.f32.gmra.mxu2 %vm362_vm0, %v333_v61  ;;  %v792_v61 = vld [vmem:[%s2189_s2 + $0xc0] sm:$0xff] }
  0x8f   : > { %1301 = vmatmul.msk.f32.gmra.mxu3 %vm362_vm0, %v351_v62 }
  0x94   : > { %1255 = vmatmul.msk.f32.gmra.mxu0 %vm362_vm0, %v305_v63  ;;  %v791_v63 = vld [vmem:[%s2189_s2 + $0xb8] sm:$0xff] }
  0x95   : > { %1284 = vmatmul.msk.f32.gmra.mxu2 %vm362_vm0, %v334_v0 }
  0x97   : > { %1302 = vmatmul.msk.f32.gmra.mxu3 %vm362_vm0, %v352_v1 }
  0x99   : > { %v1721_v2 = vpop.f32.mrf.mxu0 }
  0x9a   : > { %v1724_v4 = vpop.f32.mrf.mxu1 }
  0x9c   : > { %1256 = vmatmul.msk.f32.gmra.mxu0 %vm362_vm0, %v306_v3 }
  0x9d   : > { %1285 = vmatmul.msk.f32.gmra.mxu2 %vm362_vm0, %v335_v5  ;;  %v790_v5 = vld [vmem:[%s2189_s2 + $0xb0] sm:$0xff] }
  0x9f   : > { %1303 = vmatmul.msk.f32.gmra.mxu3 %vm362_vm0, %v353_v6 }
  0xa0   : > { %v659_v7 = vpop.f32.mrf.mxu2 }
  0xa1   : > { %v1734_v9 = vpop.f32.mrf.mxu0  ;;  %v861_v29 = vmul.f32 %v797_v25, %v659_v7 }
  0xa2   : > { %v1737_v11 = vpop.f32.mrf.mxu1  ;;  %v713_v13 = vpop.f32.mrf.mxu3 }
  0xa3   : > { %v879_v14 = vmul.f32 %v815_v8, %v713_v13  ;;  %v789_v8 = vld [vmem:[%s2189_s2 + $0xa8] sm:$0xff]  ;;  %v788_v13 = vld [vmem:[%s2189_s2 + $0xa0] sm:$0xff] }
  0xa4   : > { %1257 = vmatmul.msk.f32.gmra.mxu0 %vm362_vm0, %v307_v10 }
  0xa5   : > { %1286 = vmatmul.msk.f32.gmra.mxu2 %vm362_vm0, %v336_v12  ;;  %936 = vmatpush.msrb.mxu3 %v879_v14 }
  0xa8   : > { %v662_v15 = vpop.f32.mrf.mxu2 }
  0xa9   : > { %v1742_v16 = vpop.f32.mrf.mxu0  ;;  %v862_v28 = vmul.f32 %v798_v21, %v662_v15  ;;  %v852_v21 = vmul.f32 %v788_v13, %v1737_v11 }
  0xaa   : > { %v1745_v18 = vpop.f32.mrf.mxu1  ;;  %v1747_v19 = vpop.f32.mrf.mxu3 }
  0xab   : > { %v853_v12 = vmul.f32 %v789_v8, %v1745_v18  ;;  %v776_v8 = vld [vmem:[%s2189_s2 + $0x40] sm:$0xff] }
  0xac   : > { %1258 = vmatmul.msk.f32.gmra.mxu0 %vm362_vm0, %v308_v17  ;;  %v787_v17 = vld [vmem:[%s2189_s2 + $0x98] sm:$0xff] }
  0xad   : > { %v851_v18 = vmul.f32 %v787_v17, %v1724_v4  ;;  %v783_v4 = vld [vmem:[%s2189_s2 + $0x78] sm:$0xff] }
  0xb0   : > { %v665_v22 = vpop.f32.mrf.mxu2 }
  0xb1   : > { %v863_v23 = vmul.f32 %v799_v20, %v665_v22  ;;  %v1756_v24 = vpop.f32.mrf.mxu0 }
  0xb2   : > { %v638_v26 = vpop.f32.mrf.mxu1  ;;  %v1761_v27 = vpop.f32.mrf.mxu3 }
  0xb3   : > { %916 = vmatpush.msrb.mxu2 %v863_v23  ;;  %v854_v10 = vmul.f32 %v790_v5, %v638_v26  ;;  %v777_v5 = vld [vmem:[%s2189_s2 + $0x48] sm:$0xff] }
  0xb5   : > { %917 = vmatpush.msrb.mxu2 %v862_v28 }
  0xb7   : > { %918 = vmatpush.msrb.mxu2 %v861_v29 }
  0xb8   : > { %v1763_v30 = vpop.f32.mrf.mxu2 }
  0xb9   : > { %v1765_v31 = vpop.f32.mrf.mxu0 }
  0xba   : > { %v641_v32 = vpop.f32.mrf.mxu1  ;;  %v1767_v33 = vpop.f32.mrf.mxu3 }
  0xbb   : > { %v855_v7 = vmul.f32 %v791_v63, %v641_v32 }
  0xc0   : > { %v1769_v34 = vpop.f32.mrf.mxu2 }
  0xc1   : > { %v1771_v35 = vpop.f32.mrf.mxu0 }
  0xc2   : > { %v644_v36 = vpop.f32.mrf.mxu1  ;;  %v1773_v37 = vpop.f32.mrf.mxu3 }
  0xc3   : > { %v856_v1 = vmul.f32 %v792_v61, %v644_v36 }
  0xc8   : > { %v1775_v38 = vpop.f32.mrf.mxu2 }
  0xc9   : > { %v1777_v39 = vpop.f32.mrf.mxu0 }
  0xca   : > { %v647_v40 = vpop.f32.mrf.mxu1  ;;  %v1779_v41 = vpop.f32.mrf.mxu3 }
  0xcb   : > { %v857_v62 = vmul.f32 %v793_v59, %v647_v40 }
  0xd0   : > { %v1781_v42 = vpop.f32.mrf.mxu2 }
  0xd1   : > { %v1783_v43 = vpop.f32.mrf.mxu0 }
  0xd2   : > { %v650_v44 = vpop.f32.mrf.mxu1  ;;  %v1785_v45 = vpop.f32.mrf.mxu3 }
  0xd3   : > { %v858_v60 = vmul.f32 %v794_v54, %v650_v44  ;;  %v782_v44 = vld [vmem:[%s2189_s2 + $0x70] sm:$0xff] }
  0xd8   : > { %v1787_v46 = vpop.f32.mrf.mxu2 }
  0xd9   : > { %v1789_v47 = vpop.f32.mrf.mxu0 }
  0xda   : > { %v653_v48 = vpop.f32.mrf.mxu1  ;;  %v1791_v49 = vpop.f32.mrf.mxu3  ;;  %v840_v13 = vmul.f32 %v776_v8, %v1789_v47  ;;  %v772_v47 = vld [vmem:[%s2189_s2 + $0x20] sm:$0xff]  ;;  %v831_v8 = vld [vmem:[%s2189_s2 + $0x1f8] sm:$0xff] }
  0xdb   : > { %v859_v57 = vmul.f32 %v795_v50, %v653_v48 }
  0xe0   : > { %v1796_v51 = vpop.f32.mrf.mxu2 }
  0xe1   : > { %v1801_v53 = vpop.f32.mrf.mxu0 }
  0xe2   : > { %v656_v55 = vpop.f32.mrf.mxu1  ;;  %v1806_v56 = vpop.f32.mrf.mxu3 }
  0xe3   : > { %v860_v58 = vmul.f32 %v796_v52, %v656_v55  ;;  %v781_v52 = vld [vmem:[%s2189_s2 + $0x68] sm:$0xff]  ;;  %v780_v55 = vld [vmem:[%s2189_s2 + $0x60] sm:$0xff] }
  0xe5   : > { %919 = vmatpush.msrb.mxu2 %v860_v58  ;;  %v779_v58 = vld [vmem:[%s2189_s2 + $0x58] sm:$0xff] }
  0xe7   : > { %920 = vmatpush.msrb.mxu2 %v859_v57 }
  0xe8   : > { %v1817_v0 = vpop.f32.mrf.mxu2 }
  0xe9   : > { %921 = vmatpush.msrb.mxu2 %v858_v60  ;;  %v602_v3 = vpop.f32.mrf.mxu0 }
  0xea   : > { %v1822_v6 = vpop.f32.mrf.mxu3 }
  0xeb   : > { %922 = vmatpush.msrb.mxu2 %v857_v62  ;;  %v778_v62 = vld [vmem:[%s2189_s2 + $0x50] sm:$0xff] }
  0xed   : > { %923 = vmatpush.msrb.mxu2 %v856_v1 }
  0xef   : > { %924 = vmatpush.msrb.mxu2 %v855_v7  ;;  %v842_v7 = vmul.f32 %v778_v62, %v602_v3  ;;  %v774_v3 = vld [vmem:[%s2189_s2 + $0x30] sm:$0xff]  ;;  %v769_v62 = vld [vmem:[%s2189_s2 + $0x8] sm:$0xff] }
  0xf0   : > { %v1831_v14 = vpop.f32.mrf.mxu2 }
  0xf1   : > { %925 = vmatpush.msrb.mxu2 %v854_v10  ;;  %v605_v15 = vpop.f32.mrf.mxu0  ;;  %v841_v10 = vmul.f32 %v777_v5, %v1801_v53  ;;  %v773_v53 = vld [vmem:[%s2189_s2 + $0x28] sm:$0xff] }
  0xf2   : > { %v1836_v20 = vpop.f32.mrf.mxu3  ;;  %v843_v1 = vmul.f32 %v779_v58, %v605_v15 }
  0xf3   : > { %926 = vmatpush.msrb.mxu2 %v853_v12  ;;  %v775_v12 = vld [vmem:[%s2189_s2 + $0x38] sm:$0xff] }
  0xf5   : > { %927 = vmatpush.msrb.mxu2 %v852_v21  ;;  %v839_v21 = vmul.f32 %v775_v12, %v1783_v43  ;;  %v814_v43 = vld [vmem:[%s2189_s2 + $0x170] sm:$0xff]  ;;  %v768_v12 = vld [vmem:[%s2189_s2] sm:$0xff] }
  0xf7   : > { %928 = vmatpush.msrb.mxu2 %v851_v18 }
  0xf8   : > { %v1840_v22 = vpop.f32.mrf.mxu2 }
  0xf9   : > { %v608_v23 = vpop.f32.mrf.mxu0 }
  0xfa   : > { %v1842_v25 = vpop.f32.mrf.mxu3  ;;  %v844_v59 = vmul.f32 %v780_v55, %v608_v23  ;;  %v838_v23 = vmul.f32 %v774_v3, %v1777_v39  ;;  %v785_v39 = vld [vmem:[%s2189_s2 + $0x88] sm:$0xff] }
  0xfb   : > { %v765_v3 = vld [vmem:[%s2190_s3 + $0x8] sm:$0xff] }
 0x100   : > { %v1844_v26 = vpop.f32.mrf.mxu2 }
 0x101   : > { %v611_v28 = vpop.f32.mrf.mxu0 }
 0x102   : > { %v1846_v29 = vpop.f32.mrf.mxu3  ;;  %v845_v57 = vmul.f32 %v781_v52, %v611_v28  ;;  %v837_v28 = vmul.f32 %v773_v53, %v1771_v35  ;;  %v813_v35 = vld [vmem:[%s2189_s2 + $0x168] sm:$0xff] }
 0x108   : > { %v1848_v32 = vpop.f32.mrf.mxu2 }
 0x109   : > { %v614_v36 = vpop.f32.mrf.mxu0 }
 0x10a   : > { %v1850_v40 = vpop.f32.mrf.mxu3  ;;  %v846_v54 = vmul.f32 %v782_v44, %v614_v36  ;;  %v771_v36 = vld [vmem:[%s2189_s2 + $0x18] sm:$0xff]  ;;  %v836_v44 = vmul.f32 %v772_v47, %v1765_v31  ;;  %v812_v31 = vld [vmem:[%s2189_s2 + $0x160] sm:$0xff] }
 0x110   : > { %v1855_v11 = vpop.f32.mrf.mxu2 }
 0x111   : > { %v617_v48 = vpop.f32.mrf.mxu0 }
 0x112   : > { %v847_v50 = vmul.f32 %v783_v4, %v617_v48  ;;  %v1869_v61 = vpop.f32.mrf.mxu3  ;;  %v786_v4 = vld [vmem:[%s2189_s2 + $0x90] sm:$0xff] }
 0x114   : > { %896 = vmatpush.msrb.mxu1 %v847_v50  ;;  %v770_v50 = vld [vmem:[%s2189_s2 + $0x10] sm:$0xff] }
 0x115   : > { %v834_v5 = vmul.f32 %v770_v50, %v1742_v16  ;;  %v833_v16 = vmul.f32 %v769_v62, %v1734_v9  ;;  %v809_v9 = vld [vmem:[%s2189_s2 + $0x148] sm:$0xff] }
 0x116   : > { %897 = vmatpush.msrb.mxu1 %v846_v54  ;;  %v784_v54 = vld [vmem:[%s2189_s2 + $0x80] sm:$0xff]  ;;  %v873_v47 = vmul.f32 %v809_v9, %v1844_v26  ;;  %v806_v26 = vld [vmem:[%s2189_s2 + $0x130] sm:$0xff] }
 0x118   : > { %v704_v60 = vpop.f32.mrf.mxu2  ;;  %898 = vmatpush.msrb.mxu1 %v845_v57  ;;  %v835_v57 = vmul.f32 %v771_v36, %v1756_v24 }
 0x119   : > { %v620_v63 = vpop.f32.mrf.mxu0 }
 0x11a   : > { %899 = vmatpush.msrb.mxu1 %v844_v59  ;;  %v758_v18 = vpop.f32.mrf.mxu3 }
 0x11c   : > { %900 = vmatpush.msrb.mxu1 %v843_v1 }
 0x11e   : > { %901 = vmatpush.msrb.mxu1 %v842_v7  ;;  %v811_v7 = vld [vmem:[%s2189_s2 + $0x158] sm:$0xff] }
 0x120   : > { %v707_v15 = vpop.f32.mrf.mxu2  ;;  %902 = vmatpush.msrb.mxu1 %v841_v10  ;;  %v848_v10 = vmul.f32 %v784_v54, %v620_v63  ;;  %v875_v63 = vmul.f32 %v811_v7, %v1855_v11  ;;  %v764_v11 = vld [vmem:[%s2190_s3] sm:$0xff]  ;;  %v766_v7 = vld [vmem:[%s2190_s3 + $0x10] sm:$0xff] }
 0x121   : > { %v623_v17 = vpop.f32.mrf.mxu0  ;;  %v877_v1 = vmul.f32 %v813_v35, %v707_v15  ;;  %v810_v15 = vld [vmem:[%s2189_s2 + $0x150] sm:$0xff]  ;;  %v870_v35 = vmul.f32 %v806_v26, %v1817_v0  ;;  %v803_v0 = vld [vmem:[%s2189_s2 + $0x118] sm:$0xff] }
 0x122   : > { %903 = vmatpush.msrb.mxu1 %v840_v13  ;;  %v849_v58 = vmul.f32 %v785_v39, %v623_v17  ;;  %v761_v24 = vpop.f32.mrf.mxu3  ;;  %v876_v13 = vmul.f32 %v812_v31, %v704_v60  ;;  %v830_v60 = vld [vmem:[%s2189_s2 + $0x1f0] sm:$0xff]  ;;  %v874_v53 = vmul.f32 %v810_v15, %v1848_v32  ;;  %v807_v32 = vld [vmem:[%s2189_s2 + $0x138] sm:$0xff] }
 0x123   : > { %v895_v17 = vmul.f32 %v831_v8, %v761_v24  ;;  %v817_v24 = vld [vmem:[%s2189_s2 + $0x188] sm:$0xff] }
 0x124   : > { %904 = vmatpush.msrb.mxu1 %v839_v21  ;;  %v832_v21 = vmul.f32 %v768_v12, %v1721_v2  ;;  %v808_v2 = vld [vmem:[%s2189_s2 + $0x140] sm:$0xff] }
 0x125   : > { %v872_v36 = vmul.f32 %v808_v2, %v1840_v22  ;;  %v805_v22 = vld [vmem:[%s2189_s2 + $0x128] sm:$0xff] }
 0x126   : > { %905 = vmatpush.msrb.mxu1 %v838_v23  ;;  %v829_v23 = vld [vmem:[%s2189_s2 + $0x1e8] sm:$0xff]  ;;  %v869_v50 = vmul.f32 %v805_v22, %v1796_v51  ;;  %v802_v51 = vld [vmem:[%s2189_s2 + $0x110] sm:$0xff] }
 0x127   : > { %v893_v39 = vmul.f32 %v829_v23, %v1869_v61  ;;  %v826_v61 = vld [vmem:[%s2189_s2 + $0x1d0] sm:$0xff] }
 0x128   : > { %v710_v48 = vpop.f32.mrf.mxu2  ;;  %906 = vmatpush.msrb.mxu1 %v837_v28  ;;  %v894_v28 = vmul.f32 %v830_v60, %v758_v18  ;;  %v827_v18 = vld [vmem:[%s2189_s2 + $0x1d8] sm:$0xff] }
 0x129   : > { %v878_v52 = vmul.f32 %v814_v43, %v710_v48  ;;  %v626_v55 = vpop.f32.mrf.mxu0  ;;  %v828_v43 = vld [vmem:[%s2189_s2 + $0x1e0] sm:$0xff]  ;;  %v891_v48 = vmul.f32 %v827_v18, %v1846_v29 }
 0x12a   : > { %907 = vmatpush.msrb.mxu1 %v836_v44  ;;  %v850_v59 = vmul.f32 %v786_v4, %v626_v55  ;;  %v871_v4 = vmul.f32 %v807_v32, %v1831_v14  ;;  %v892_v44 = vmul.f32 %v828_v43, %v1850_v40  ;;  %v804_v14 = vld [vmem:[%s2189_s2 + $0x120] sm:$0xff]  ;;  %v825_v40 = vld [vmem:[%s2189_s2 + $0x1c8] sm:$0xff] }
 0x12b   : > { %937 = vmatpush.msrb.mxu3 %v878_v52  ;;  %v890_v52 = vmul.f32 %v826_v61, %v1842_v25  ;;  %v824_v29 = vld [vmem:[%s2189_s2 + $0x1c0] sm:$0xff]  ;;  %v868_v54 = vmul.f32 %v804_v14, %v1787_v46  ;;  %v889_v55 = vmul.f32 %v825_v40, %v1836_v20  ;;  %v823_v25 = vld [vmem:[%s2189_s2 + $0x1b8] sm:$0xff]  ;;  %v801_v46 = vld [vmem:[%s2189_s2 + $0x108] sm:$0xff] }
 0x12c   : > { %908 = vmatpush.msrb.mxu1 %v835_v57  ;;  %929 = vmatpush.msrb.mxu2 %v850_v59  ;;  %v867_v57 = vmul.f32 %v803_v0, %v1781_v42  ;;  %v888_v31 = vmul.f32 %v824_v29, %v1822_v6  ;;  %v822_v20 = vld [vmem:[%s2189_s2 + $0x1b0] sm:$0xff]  ;;  %v887_v59 = vmul.f32 %v823_v25, %v1806_v56  ;;  %v800_v42 = vld [vmem:[%s2189_s2 + $0x100] sm:$0xff]  ;;  %v821_v6 = vld [vmem:[%s2189_s2 + $0x1a8] sm:$0xff] }
 0x12d   : > { %938 = vmatpush.msrb.mxu3 %v877_v1  ;;  %v865_v62 = vmul.f32 %v801_v46, %v1769_v34  ;;  %v886_v1 = vmul.f32 %v822_v20, %v1791_v49  ;;  %v864_v56 = vmul.f32 %v800_v42, %v1763_v30  ;;  %v819_v34 = vld [vmem:[%s2189_s2 + $0x198] sm:$0xff]  ;;  %v818_v30 = vld [vmem:[%s2189_s2 + $0x190] sm:$0xff] }
 0x12e   : > { %909 = vmatpush.msrb.mxu1 %v834_v5  ;;  %930 = vmatpush.msrb.mxu2 %v849_v58  ;;  %v866_v58 = vmul.f32 %v802_v51, %v1775_v38  ;;  %v820_v38 = vld [vmem:[%s2189_s2 + $0x1a0] sm:$0xff]  ;;  %v885_v5 = vmul.f32 %v821_v6, %v1785_v45  ;;  %v883_v45 = vmul.f32 %v819_v34, %v1773_v37  ;;  %v767_v37 = vld [vmem:[%s2190_s3 + $0x18] sm:$0xff] }
 0x12f   : > { %939 = vmatpush.msrb.mxu3 %v876_v13  ;;  %v884_v49 = vmul.f32 %v820_v38, %v1779_v41  ;;  %v882_v8 = vmul.f32 %v818_v30, %v1767_v33  ;;  %v816_v41 = vld [vmem:[%s2189_s2 + $0x180] sm:$0xff] }
 0x130   : > { %910 = vmatpush.msrb.mxu1 %v833_v16  ;;  %931 = vmatpush.msrb.mxu2 %v848_v10  ;;  %v881_v10 = vmul.f32 %v817_v24, %v1761_v27  ;;  %v880_v12 = vmul.f32 %v816_v41, %v1747_v19 }
 0x131   : > { %940 = vmatpush.msrb.mxu3 %v875_v63  ;;  %932 = vmatmul.f32.vlgmr.msrb.gmra.mxu2 %v765_v3 }
 0x132   : > { %911 = vmatpush.msrb.mxu1 %v832_v21 }
 0x133   : > { %941 = vmatpush.msrb.mxu3 %v874_v53  ;;  %912 = vmatmul.f32.vlgmr.msrb.gmra.mxu1 %v764_v11 }
 0x134   : > { %956 = vmatpush.msra.mxu1 %v895_v17 }
 0x135   : > { %942 = vmatpush.msrb.mxu3 %v873_v47 }
 0x136   : > { %957 = vmatpush.msra.mxu1 %v894_v28 }
 0x137   : > { %943 = vmatpush.msrb.mxu3 %v872_v36 }
 0x138   : > { %958 = vmatpush.msra.mxu1 %v893_v39 }
 0x139   : > { %944 = vmatpush.msrb.mxu3 %v871_v4 }
 0x13a   : > { %959 = vmatpush.msra.mxu1 %v892_v44 }
 0x13b   : > { %945 = vmatpush.msrb.mxu3 %v870_v35 }
 0x13c   : > { %960 = vmatpush.msra.mxu1 %v891_v48 }
 0x13d   : > { %946 = vmatpush.msrb.mxu3 %v869_v50 }
 0x13e   : > { %961 = vmatpush.msra.mxu1 %v890_v52 }
 0x13f   : > { %947 = vmatpush.msrb.mxu3 %v868_v54 }
 0x140   : > { %962 = vmatpush.msra.mxu1 %v889_v55 }
 0x141   : > { %948 = vmatpush.msrb.mxu3 %v867_v57 }
 0x142   : > { %963 = vmatpush.msra.mxu1 %v888_v31 }
 0x143   : > { %949 = vmatpush.msrb.mxu3 %v866_v58 }
 0x144   : > { %964 = vmatpush.msra.mxu1 %v887_v59 }
 0x145   : > { %950 = vmatpush.msrb.mxu3 %v865_v62 }
 0x146   : > { %965 = vmatpush.msra.mxu1 %v886_v1 }
 0x147   : > { %951 = vmatpush.msrb.mxu3 %v864_v56 }
 0x148   : > { %966 = vmatpush.msra.mxu1 %v885_v5  ;;  %952 = vmatmul.f32.vlgmr.msrb.gmra.mxu3 %v766_v7 }
 0x14a   : > { %967 = vmatpush.msra.mxu1 %v884_v49 }
 0x14c   : > { %968 = vmatpush.msra.mxu1 %v883_v45 }
 0x14e   : > { %969 = vmatpush.msra.mxu1 %v882_v8 }
 0x150   : > { %970 = vmatpush.msra.mxu1 %v881_v10 }
 0x152   : > { %971 = vmatpush.msra.mxu1 %v880_v12 }
 0x153   : > { %972 = vmatmul.f32.vlgmr.msra.gmra.mxu1 %v767_v37 }
 0x1b0   : > { %v913_v13 = vpop.f32.mrf.mxu1 }
 0x1b4   : > { %v933_v16 = vpop.f32.mrf.mxu2 }
 0x1b5   : > { %v934_v33 = vadd.f32 %v933_v16, %v913_v13 }
 0x1cb   : > { %v953_v15 = vpop.f32.mrf.mxu3 }
 0x1cc   : > { %v954_v3 = vadd.f32 %v953_v15, %v934_v33 }
 0x1d0   : > { %v973_v63 = vpop.f32.mrf.mxu1 }
 0x1d1   : > { %v974_v17 = vadd.f32 %v973_v63, %v954_v3  ;;  %983 = sbr.rel (%p1305_p4) target bundleno = 827 (0x33b), region = 48 }
 0x1d3   : > { %v976_v21 = vmul.f32 0.0022675737, %v974_v17 }
 0x1d5   : > { %979 = vst [vmem:[%s978_s25] sm:$0xff] %v976_v21 }
 0x1d6   : > { %v1056_v32 = vld [vmem:[%s2191_s4 + $0x78] sm:$0xff]  ;;  %v1055_v36 = vld [vmem:[%s2191_s4 + $0x70] sm:$0xff]  ;;  %v1054_v26 = vld [vmem:[%s2191_s4 + $0x68] sm:$0xff]  ;;  %v1513_v56 = vmov 0.6931472   ;;  %v1000_v7 = vlaneseq }
 0x1d7   : > { %v1095_v43 = vld [vmem:[%s2192_s5 + $0x78] sm:$0xff]  ;;  %1057 = vmatpush.msra.mxu0 %v1056_v32  ;;  %1338 = vmatpush.msra.mxu2 %v1056_v32  ;;  %v1094_v39 = vld [vmem:[%s2192_s5 + $0x70] sm:$0xff]  ;;  %v1093_v18 = vld [vmem:[%s2192_s5 + $0x68] sm:$0xff]  ;;  %1405 = vrcp.f32 %v1513_v56  ;;  %v1514_v32 = vmov 0.0  }
 0x1d8   : > { %1096 = vmatpush.msra.mxu1 %v1095_v43  ;;  %1354 = vmatpush.msra.mxu3 %v1095_v43  ;;  %v1053_v4 = vld [vmem:[%s2191_s4 + $0x60] sm:$0xff]  ;;  %v1052_v22 = vld [vmem:[%s2191_s4 + $0x58] sm:$0xff]  ;;  %v1051_v35 = vld [vmem:[%s2191_s4 + $0x50] sm:$0xff]  ;;  %v1001_v45 = vand.u32 127, %v1000_v7 }
 0x1d9   : > { %1058 = vmatpush.msra.mxu0 %v1055_v36  ;;  %1339 = vmatpush.msra.mxu2 %v1055_v36  ;;  %v1092_v44 = vld [vmem:[%s2192_s5 + $0x60] sm:$0xff]  ;;  %v1091_v61 = vld [vmem:[%s2192_s5 + $0x58] sm:$0xff]  ;;  %v1090_v48 = vld [vmem:[%s2192_s5 + $0x50] sm:$0xff] }
 0x1da   : > { %1097 = vmatpush.msra.mxu1 %v1094_v39  ;;  %1355 = vmatpush.msra.mxu3 %v1094_v39  ;;  %v1050_v14 = vld [vmem:[%s2191_s4 + $0x48] sm:$0xff]  ;;  %v1049_v50 = vld [vmem:[%s2191_s4 + $0x40] sm:$0xff]  ;;  %v1048_v0 = vld [vmem:[%s2191_s4 + $0x38] sm:$0xff]  ;;  %vm1004_vm3 = vcmp.lt.s32.totalorder %v1001_v45, 44 }
 0x1db   : > { %1059 = vmatpush.msra.mxu0 %v1054_v26  ;;  %1340 = vmatpush.msra.mxu2 %v1054_v26  ;;  %v1089_v40 = vld [vmem:[%s2192_s5 + $0x48] sm:$0xff]  ;;  %v1088_v52 = vld [vmem:[%s2192_s5 + $0x40] sm:$0xff]  ;;  %v1087_v29 = vld [vmem:[%s2192_s5 + $0x38] sm:$0xff] }
 0x1dc   : > { %v2056_v19 = vld [vmem:[#allocation2] sm:$0xff]  ;;  %v2058_v27 = vld [vmem:[#allocation2 + $0x8] sm:$0xff]  ;;  %1098 = vmatpush.msra.mxu1 %v1093_v18  ;;  %1356 = vmatpush.msra.mxu3 %v1093_v18  ;;  %v1047_v54 = vld [vmem:[%s2191_s4 + $0x30] sm:$0xff] }
 0x1dd   : > { %v986_v9 = vadd.f32 %v2058_v27, %v2056_v19  ;;  %1060 = vmatpush.msra.mxu0 %v1053_v4  ;;  %1341 = vmatpush.msra.mxu2 %v1053_v4  ;;  %v1086_v55 = vld [vmem:[%s2192_s5 + $0x30] sm:$0xff]  ;;  %v1046_v51 = vld [vmem:[%s2191_s4 + $0x28] sm:$0xff]  ;;  %v1045_v57 = vld [vmem:[%s2191_s4 + $0x20] sm:$0xff]  ;;  %v1406_v5 = vpop.eup %1405 }
 0x1de   : > { %1099 = vmatpush.msra.mxu1 %v1092_v44  ;;  %1357 = vmatpush.msra.mxu3 %v1092_v44  ;;  %v1085_v25 = vld [vmem:[%s2192_s5 + $0x28] sm:$0xff]  ;;  %v1084_v31 = vld [vmem:[%s2192_s5 + $0x20] sm:$0xff]  ;;  %v1044_v46 = vld [vmem:[%s2191_s4 + $0x18] sm:$0xff]  ;;  %v1031_v24 = vmul.f32 0.6931472, %v1406_v5  ;;  %vm1035_vm6 = vweird.f32 %v1406_v5 }
 0x1df   : > { %987 = vadd.xlane.f32.xlu0 %v986_v9  ;;  %1061 = vmatpush.msra.mxu0 %v1052_v22  ;;  %v1083_v20 = vld [vmem:[%s2192_s5 + $0x18] sm:$0xff]  ;;  %v1043_v58 = vld [vmem:[%s2191_s4 + $0x10] sm:$0xff]  ;;  %v1042_v42 = vld [vmem:[%s2191_s4 + $0x8] sm:$0xff] }
 0x1e0   : > { %1342 = vmatpush.msra.mxu2 %v1052_v22  ;;  %1100 = vmatpush.msra.mxu1 %v1091_v61  ;;  %v1082_v59 = vld [vmem:[%s2192_s5 + $0x10] sm:$0xff]  ;;  %v1081_v6 = vld [vmem:[%s2192_s5 + $0x8] sm:$0xff]  ;;  %v1041_v62 = vld [vmem:[%s2191_s4] sm:$0xff]  ;;  %v1032_v37 = vsub.f32 1.0, %v1031_v24 }
 0x1e1   : > { %1358 = vmatpush.msra.mxu3 %v1091_v61  ;;  %1062 = vmatpush.msra.mxu0 %v1051_v35  ;;  %v1080_v1 = vld [vmem:[%s2192_s5] sm:$0xff] }
 0x1e2   : > { %1343 = vmatpush.msra.mxu2 %v1051_v35  ;;  %1101 = vmatpush.msra.mxu1 %v1090_v48  ;;  %v1033_v17 = vmul.f32 %v1406_v5, %v1032_v37 }
 0x1e3   : > { %1359 = vmatpush.msra.mxu3 %v1090_v48  ;;  %1063 = vmatpush.msra.mxu0 %v1050_v14 }
 0x1e4   : > { %1344 = vmatpush.msra.mxu2 %v1050_v14  ;;  %1102 = vmatpush.msra.mxu1 %v1089_v40  ;;  %v1034_v9 = vadd.f32 %v1406_v5, %v1033_v17 }
 0x1e5   : > { %1360 = vmatpush.msra.mxu3 %v1089_v40  ;;  %1064 = vmatpush.msra.mxu0 %v1049_v50 }
 0x1e6   : > { %1345 = vmatpush.msra.mxu2 %v1049_v50  ;;  %1103 = vmatpush.msra.mxu1 %v1088_v52 }
 0x1e7   : > { %1361 = vmatpush.msra.mxu3 %v1088_v52  ;;  %1065 = vmatpush.msra.mxu0 %v1048_v0 }
 0x1e8   : > { %1346 = vmatpush.msra.mxu2 %v1048_v0  ;;  %1104 = vmatpush.msra.mxu1 %v1087_v29 }
 0x1e9   : > { %1362 = vmatpush.msra.mxu3 %v1087_v29  ;;  %1066 = vmatpush.msra.mxu0 %v1047_v54 }
 0x1ea   : > { %1347 = vmatpush.msra.mxu2 %v1047_v54  ;;  %1105 = vmatpush.msra.mxu1 %v1086_v55 }
 0x1eb   : > { %1363 = vmatpush.msra.mxu3 %v1086_v55  ;;  %1067 = vmatpush.msra.mxu0 %v1046_v51 }
 0x1ec   : > { %1348 = vmatpush.msra.mxu2 %v1046_v51  ;;  %1106 = vmatpush.msra.mxu1 %v1085_v25 }
 0x1ed   : > { %1364 = vmatpush.msra.mxu3 %v1085_v25  ;;  %1068 = vmatpush.msra.mxu0 %v1045_v57 }
 0x1ee   : > { %1349 = vmatpush.msra.mxu2 %v1045_v57  ;;  %1107 = vmatpush.msra.mxu1 %v1084_v31 }
 0x1ef   : > { %1365 = vmatpush.msra.mxu3 %v1084_v31  ;;  %1069 = vmatpush.msra.mxu0 %v1044_v46 }
 0x1f0   : > { %1350 = vmatpush.msra.mxu2 %v1044_v46  ;;  %1108 = vmatpush.msra.mxu1 %v1083_v20 }
 0x1f1   : > { %1366 = vmatpush.msra.mxu3 %v1083_v20  ;;  %1070 = vmatpush.msra.mxu0 %v1043_v58 }
 0x1f2   : > { %1351 = vmatpush.msra.mxu2 %v1043_v58  ;;  %1109 = vmatpush.msra.mxu1 %v1082_v59 }
 0x1f3   : > { %1367 = vmatpush.msra.mxu3 %v1082_v59  ;;  %1071 = vmatpush.msra.mxu0 %v1042_v42 }
 0x1f4   : > { %1352 = vmatpush.msra.mxu2 %v1042_v42  ;;  %1110 = vmatpush.msra.mxu1 %v1081_v6 }
 0x1f5   : > { %1368 = vmatpush.msra.mxu3 %v1081_v6  ;;  %1072 = vmatpush.msra.mxu0 %v1041_v62 }
 0x1f6   : > { %1353 = vmatpush.msra.mxu2 %v1041_v62  ;;  %1111 = vmatpush.msra.mxu1 %v1080_v1 }
 0x1f7   : > { %1369 = vmatpush.msra.mxu3 %v1080_v1 }
 0x252   : > { %v988_v60 = vpop.xlane.xlu0 %987 }
 0x253   : > { %v989_v53 = vrot.slane %v988_v60, 4 }
 0x255   : > { %v990_v11 = vadd.f32 %v989_v53, %v988_v60  ;;  %v1036_v53 = vsel %vm1035_vm6, %v1406_v5, %v1034_v9 }
 0x257   : > { %v991_v2 = vrot.slane %v990_v11, 2 }
 0x259   : > { %v992_v23 = vadd.f32 %v991_v2, %v990_v11 }
 0x25b   : > { %v993_v47 = vrot.slane %v992_v23, 1 }
 0x25d   : > { %v994_v28 = vadd.f32 %v993_v47, %v992_v23 }
 0x25f   : > { %1370 = vpush %v994_v28 }
 0x290   : > { %s1371_s10 = spop %1370 }
 0x291   : > { %s996_s11 = smul.f32 0.0014204546, %s1371_s10 }
 0x293   : > { %v1007_v38 = vstv %s996_s11 }
 0x294   : > { %1407 = vrcp.f32 %v1007_v38  ;;  %v1021_v8 = vand.u32 2147483648, %v1007_v38  ;;  %v1019_v10 = vand.u32 2147483647, %v1007_v38  ;;  %vm1015_vm2 = vweird.f32 %v1007_v38 }
 0x295   : > { %v1008_v33 = vsel %vm1004_vm3, %v2056_v19, %v1007_v38  ;;  %v1009_v3 = vsel %vm1004_vm3, %v2058_v27, %v1007_v38 }
 0x296   : > { %v1022_v13 = vor.u32 1.1754944e-38, %v1021_v8  ;;  %vm1020_vm5 = vcmp.eq.f32.partialorder %v1019_v10, 8.507059e+37 }
 0x29a   : > { %v1408_v34 = vpop.eup %1407 }
 0x29b   : > { %v1011_v49 = vmul.f32 %v1408_v34, %v1007_v38  ;;  %vm1016_vm1 = vweird.f32 %v1408_v34 }
 0x29c   : > { %vm1017_vm4 = vmor %vm1015_vm2, %vm1016_vm1 }
 0x29d   : > { %v1012_v30 = vsub.f32 1.0, %v1011_v49 }
 0x29f   : > { %v1013_v41 = vmul.f32 %v1408_v34, %v1012_v30 }
 0x2a1   : > { %v1014_v12 = vadd.f32 %v1408_v34, %v1013_v41 }
 0x2a3   : > { %v1018_v16 = vsel %vm1017_vm4, %v1408_v34, %v1014_v12 }
 0x2a4   : > { %v1023_v15 = vsel %vm1020_vm5, %v1022_v13, %v1018_v16 }
 0x2a5   : > { %v1024_v63 = vmul.f32 %v1023_v15, %v1008_v33  ;;  %v1025_v21 = vmul.f32 %v1023_v15, %v1009_v3 }
 0x2a7   : > { %1409 = vlog2.f32 %v1024_v63 }
 0x2a8   : > { %1411 = vlog2.f32 %v1025_v21 }
 0x2ad   : > { %v1410_v60 = vpop.eup %1409 }
 0x2ae   : > { %v1412_v11 = vpop.eup %1411  ;;  %v1027_v2 = vmul.f32 0.6931472, %v1410_v60 }
 0x2af   : > { %v1029_v23 = vmul.f32 0.6931472, %v1412_v11 }
 0x2b0   : > { %v1037_v47 = vmul.f32 %v1036_v53, %v1027_v2 }
 0x2b1   : > { %v1038_v28 = vmul.f32 %v1036_v53, %v1029_v23 }
 0x2b2   : > { %1039 = vst [vmem:[#allocation2] sm:$0xff] %v1037_v47  ;;  %1073 = vmatmul.f32.vlgmr.msra.gmra.mxu0 %v1037_v47  ;;  %1112 = vmatmul.f32.vlgmr.msra.gmra.mxu1 %v1037_v47 }
 0x2b3   : > { %1040 = vst [vmem:[#allocation2 + $0x8] sm:$0xff] %v1038_v28  ;;  %1076 = vmatmul.f32.vlgmr.msra.gmra.mxu2 %v1038_v28  ;;  %1115 = vmatmul.f32.vlgmr.msra.gmra.mxu3 %v1038_v28 }
 0x32f   : > { %v1074_v19 = vpop.f32.mrf.mxu0  ;;  %v1113_v27 = vpop.f32.mrf.mxu1 }
 0x330   : > { %1119 = vst [vmem:[#allocation4] sm:$0xff] %v1074_v19  ;;  %vm1121_vm7 = vcmp.lt.f32.partialorder %v1074_v19, 0.0  ;;  %vm1123_vm8 = vcmp.gt.f32.partialorder %v1113_v27, 0.0 }
 0x331   : > { %vm1125_vm9 = vmand %vm1121_vm7, %vm1123_vm8 }
 0x332   : > { %v1127_v43 = vsel %vm1125_vm9, 1.0, %v1514_v32 }
 0x333   : > { %1129 = vst [vmem:[#allocation6] sm:$0xff] %v1127_v43 }
 0x336   : > { %v1077_v36 = vpop.f32.mrf.mxu2  ;;  %v1116_v39 = vpop.f32.mrf.mxu3 }
 0x337   : > { %1120 = vst [vmem:[#allocation4 + $0x8] sm:$0xff] %v1077_v36  ;;  %vm1122_vm10 = vcmp.lt.f32.partialorder %v1077_v36, 0.0  ;;  %vm1124_vm11 = vcmp.gt.f32.partialorder %v1116_v39, 0.0 }
 0x338   : > { %vm1126_vm12 = vmand %vm1122_vm10, %vm1124_vm11 }
 0x339   : > { %v1128_v26 = vsel %vm1126_vm12, 1.0, %v1514_v32 }
 0x33a   : > { %1130 = vst [vmem:[#allocation6 + $0x8] sm:$0xff] %v1128_v26 }
 0x33b PF: > { %p1384_p5 = scmp.eq.s32.totalorder %s1571_s28, 1  ;;  %s1515_s12 = smov [#allocation4]  }
 0x33c   : > { %s1150_s13 = sshll.u32 %s1515_s12, 4  ;;  %s1152_s16 = sshll.u32 %s2194_s7, 4  ;;  %s1151_s13 = int_to_ptr.vmem [resolvable:$true] %s1150_s13  ;;  %s1153_s16 = int_to_ptr.hbm [resolvable:$true] %s1152_s16 }
 0x33d   : > { %s1516_s17 = smov 128   ;;  %s1517_s18 = smov 8  }
 0x33e   : > { %1375 = dma.vmem_to_hbm [thread:$0]  (%p1384_p5), %s1151_s13, 256, %s1153_s16, [#allocation5], %s1516_s17, %s1516_s17, %s1517_s18  }
 0x33f   : > { %s1138_s21 = sshll.u32 %s2193_s6, 4  ;;  %s1518_s22 = smov [#allocation2]   ;;  %s1139_s21 = int_to_ptr.hbm [resolvable:$true] %s1138_s21 }
 0x340   : > { %s1136_s23 = sshll.u32 %s1518_s22, 4  ;;  %s1519_s24 = smov [#allocation6]   ;;  %s1137_s23 = int_to_ptr.vmem [resolvable:$true] %s1136_s23 }
 0x341   : > { %1373 = dma.vmem_to_hbm [thread:$0]  (%p1384_p5), %s1137_s23, 256, %s1139_s21, [#allocation3], %s1516_s17, %s1516_s17, %s1517_s18  }
 0x342   : > { %s1164_s25 = sshll.u32 %s1519_s24, 4  ;;  %s1166_s30 = sshll.u32 %s2195_s8, 4  ;;  %s1165_s25 = int_to_ptr.vmem [resolvable:$true] %s1164_s25  ;;  %s1167_s30 = int_to_ptr.hbm [resolvable:$true] %s1166_s30 }
 0x343   : > { %1377 = dma.vmem_to_hbm [thread:$0]  (%p1384_p5), %s1165_s25, 256, %s1167_s30, [#allocation5], %s1516_s17, %s1516_s17, %s1517_s18  }
 0x344   : > { %1502 = dma.done.wait (%p1384_p5), [#allocation3], 256  }
 0x345   : > { %1504 = vsyncadd (%p1384_p5), [#allocation3], 4294967040 }
 0x346   : > { %1506 = dma.done.wait (%p1384_p5), [#allocation5], 512  }
 0x347   : > { %1508 = vsyncadd (%p1384_p5), [#allocation5], 4294966784 }
 0x348 PF: > { %s21_s27 = sadd.s32 1, %s1511_s27  }
 0x349   : > { %p18_p6 = scmp.ge.s32.totalorder %s21_s27, 4  }
 0x34b   :  { %20 = sbr.rel (!%p18_p6) target bundleno = 2 (0x2), region = 92 }
 0x350   :  { %1193 = vsyncpa [#allocation3], 1 }
 0x351   :  { %1195 = vsyncpa [#allocation3 + $0x1], 1 }
 0x352   :  { %1196 = vsyncpa [#allocation5], 1 }

</bundles_post_ra>
